<compile_context>
chip_gen: v5e
topology: v5e:2x2
jax: 0.10.0
libtpu: 0.0.40
codegen_flags: <defaults>
</compile_context>

<pallas_src>
import functools

import jax
import jax.numpy as jnp
from jax.experimental import pallas as pl
from jax.experimental.pallas import tpu as pltpu


def _round_up(x: int, m: int) -> int:
    return ((x + m - 1) // m) * m


def _choose_tile(B: int, tm_max: int, min_grid: int = 4) -> int:
    """Pick the batch (lane-axis) tile size TM.

    - Small batches: one full-dim tile (full-extent blocks are exempt from the
      128-lane divisibility rule), grid = 1.
    - Large batches: TM is a multiple of 128, aiming for >= min_grid grid steps
      (keeps both v7x TensorCores busy), capped at tm_max. The last tile may be
      partial; Pallas masks the out-of-bounds lanes, so no padding is required.
    """
    if B <= 256:
        return B
    tm = _round_up(pl.cdiv(B, min_grid), 128)
    return min(tm, max(128, _round_up(tm_max, 128)))


def inet_kernel(xt_ref, w1_ref, w2_ref, ot_ref):
    # hT = tanh(W1 @ xT): (n_hidden, TM). MXU accumulates in f32; tanh runs in f32 on the EUP.
    ht = jnp.tanh(
        jnp.dot(w1_ref[...], xt_ref[...], preferred_element_type=jnp.float32)
    )
    # outT = W2 @ hT: (n_out, TM). Cast hT to the weight dtype for the second MXU dot
    # (no-op for f32, bf16 on the bf16 path), accumulate in f32, store in out dtype.
    ot_ref[...] = jnp.dot(
        w2_ref[...], ht.astype(w2_ref.dtype), preferred_element_type=jnp.float32
    ).astype(ot_ref.dtype)


def init_inet_params(key, n_in, n_hidden, n_out, param_dtype=jnp.float32):
    """PyTorch nn.Linear(bias=False)-style init in the NATURAL PyTorch layouts:
    w1: (n_hidden, n_in), w2: (n_out, n_hidden). No transposes needed anywhere —
    the kernel consumes weights in exactly this layout (hT = W1 @ xT, outT = W2 @ hT)."""
    k1, k2 = jax.random.split(key)
    bound1 = 1.0 / (n_in ** 0.5)
    bound2 = 1.0 / (n_hidden ** 0.5)
    w1 = jax.random.uniform(k1, (n_hidden, n_in), jnp.float32, -bound1, bound1)
    w2 = jax.random.uniform(k2, (n_out, n_hidden), jnp.float32, -bound2, bound2)
    return w1.astype(param_dtype), w2.astype(param_dtype)


@functools.partial(jax.jit, static_argnames=("tm",))
def inet_forward_t(xt, w1, w2, *, tm: int = 2048):
    """Batch-on-lanes forward: xt (n_in, B) -> outT (n_out, B).

    All tiles are lane-dense (batch on the 128-lane axis), weights stay VMEM-resident
    across grid steps, the batch grid axis is 'parallel' (v7x megacore), and the output
    dtype follows the input dtype (accumulation is always f32)."""
    n_in, B = xt.shape
    n_hidden, n_in_w = w1.shape
    n_out, n_hidden_w = w2.shape
    assert n_in_w == n_in and n_hidden_w == n_hidden

    TM = _choose_tile(B, tm)
    grid = (pl.cdiv(B, TM),)

    return pl.pallas_call(
        inet_kernel,
        out_shape=jax.ShapeDtypeStruct((n_out, B), xt.dtype),
        grid_spec=pl.GridSpec(
            grid=grid,
            in_specs=[
                # xT tile marches along the batch (lane) axis.
                pl.BlockSpec((n_in, TM), lambda i: (0, i)),
                # Weights: constant index_map -> fetched once, VMEM-resident.
                pl.BlockSpec((n_hidden, n_in), lambda i: (0, 0)),
                pl.BlockSpec((n_out, n_hidden), lambda i: (0, 0)),
            ],
            out_specs=pl.BlockSpec((n_out, TM), lambda i: (0, i)),
        ),
        compiler_params=pltpu.CompilerParams(
            # Independent batch tiles -> shard grid steps across both TensorCores on v7x.
            dimension_semantics=("parallel",),
        ),
    )(xt, w1, w2)


@functools.partial(jax.jit, static_argnames=("tm",))
def inet_forward(x, w1, w2, *, tm: int = 2048):
    """PyTorch-layout convenience wrapper: x (B, n_in) -> (B, n_out).

    Does exactly one layout pass on x and one on the (much smaller) output; callers
    that can keep activations batch-on-lanes should use inet_forward_t directly."""
    return inet_forward_t(jnp.transpose(x), w1, w2, tm=tm).T


if __name__ == "__main__":
    # Small shapes implied by the module: Inet(n_in=32, n_hidden=64, n_out=16), batch=8.
    B, n_in, n_hidden, n_out = 8, 32, 64, 16

    key = jax.random.PRNGKey(0)
    kx, kp = jax.random.split(key)

    x = jax.random.normal(kx, (B, n_in), dtype=jnp.float32)
    w1, w2 = init_inet_params(kp, n_in, n_hidden, n_out, param_dtype=jnp.float32)

    out = jax.block_until_ready(inet_forward(x, w1, w2))
    ref = jnp.tanh(x @ w1.T) @ w2.T
    assert out.shape == (B, n_out) and out.dtype == jnp.float32
    assert jnp.allclose(out, ref, atol=1e-4, rtol=1e-4), "f32 mismatch vs reference"

    # Larger bf16 batch, not a multiple of the tile: exercises the multi-step grid,
    # the masked partial final tile (no wrapper-side padding), and bf16-in/bf16-out.
    B2 = 1000
    x2 = jax.random.normal(kx, (B2, n_in), dtype=jnp.bfloat16)
    w1_bf = w1.astype(jnp.bfloat16)
    w2_bf = w2.astype(jnp.bfloat16)

    out2 = jax.block_until_ready(inet_forward(x2, w1_bf, w2_bf))
    # Reference with the same bf16 inputs / f32 accumulation / f32 tanh as the kernel.
    h_ref = jnp.tanh(jnp.dot(x2, w1_bf.T, preferred_element_type=jnp.float32))
    ref2 = jnp.dot(
        h_ref.astype(jnp.bfloat16), w2_bf.T, preferred_element_type=jnp.float32
    ).astype(jnp.bfloat16)
    assert out2.shape == (B2, n_out) and out2.dtype == jnp.bfloat16
    assert jnp.allclose(
        out2.astype(jnp.float32), ref2.astype(jnp.float32), atol=2e-2, rtol=2e-2
    ), "bf16 mismatch vs reference"

    # Transposed-I/O entry point (zero layout passes) must agree with the wrapper.
    out_t = jax.block_until_ready(inet_forward_t(jnp.transpose(x), w1, w2))
    assert jnp.allclose(out_t.T, out, atol=1e-6, rtol=1e-6)

    print("KERNEL_OK")
</pallas_src>

<mosaic_0001>
module attributes {stable_mosaic.version = 11 : i64} {
  func.func @inet_kernel(%arg0: i32, %arg1: memref<32x8xf32, #tpu.memory_space<vmem>>, %arg2: memref<64x32xf32, #tpu.memory_space<vmem>>, %arg3: memref<16x64xf32, #tpu.memory_space<vmem>>, %arg4: memref<16x8xf32, #tpu.memory_space<vmem>>) attributes {dimension_semantics = [#tpu.dimension_semantics<parallel>], iteration_bounds = array<i64: 1>, scalar_prefetch = 0 : i64, scratch_operands = 0 : i64, tpu.core_type = #tpu.core_type<tc>, window_params = [{transform_indices = @transform_0, window_bounds = array<i64: 32, 8>}, {pipeline_mode = #tpu.pipeline_mode<synchronous>, transform_indices = @transform_1, window_bounds = array<i64: 64, 32>}, {pipeline_mode = #tpu.pipeline_mode<synchronous>, transform_indices = @transform_2, window_bounds = array<i64: 16, 64>}, {transform_indices = @transform_3, window_bounds = array<i64: 16, 8>}]} {
    %c0 = arith.constant 0 : index
    %c0_0 = arith.constant 0 : index
    %0 = vector.load %arg2[%c0, %c0_0] : memref<64x32xf32, #tpu.memory_space<vmem>>, vector<64x32xf32>
    %c0_1 = arith.constant 0 : index
    %c0_2 = arith.constant 0 : index
    %1 = vector.load %arg1[%c0_1, %c0_2] : memref<32x8xf32, #tpu.memory_space<vmem>>, vector<32x8xf32>
    %cst = arith.constant dense<0.000000e+00> : vector<64x8xf32>
    %2 = tpu.matmul %0, %1, %cst {dimension_numbers = #tpu.dot_dimension_numbers<[1], [0], [0], [1], [0, 0, 1, 1], [], []>} : vector<64x32xf32>, vector<32x8xf32>, vector<64x8xf32> -> vector<64x8xf32>
    %3 = math.tanh %2 : vector<64x8xf32>
    %c0_3 = arith.constant 0 : index
    %c0_4 = arith.constant 0 : index
    %4 = vector.load %arg3[%c0_3, %c0_4] : memref<16x64xf32, #tpu.memory_space<vmem>>, vector<16x64xf32>
    %cst_5 = arith.constant dense<0.000000e+00> : vector<16x8xf32>
    %5 = tpu.matmul %4, %3, %cst_5 {dimension_numbers = #tpu.dot_dimension_numbers<[1], [0], [0], [1], [0, 0, 1, 1], [], []>} : vector<16x64xf32>, vector<64x8xf32>, vector<16x8xf32> -> vector<16x8xf32>
    %c0_6 = arith.constant 0 : index
    %c0_7 = arith.constant 0 : index
    %6 = vector.load %arg4[%c0_6, %c0_7] : memref<16x8xf32, #tpu.memory_space<vmem>>, vector<16x8xf32>
    tpu.vector_store %arg4[%c0_6, %c0_7], %5 {strides = array<i32>} : memref<16x8xf32, #tpu.memory_space<vmem>>, vector<16x8xf32>,
    return
  }
  func.func @transform_0(%arg0: i32) -> (i32, i32) {
    %c0_i32 = arith.constant 0 : i32
    %c0_i32_0 = arith.constant 0 : i32
    return %c0_i32, %arg0 : i32, i32
  }
  func.func @transform_1(%arg0: i32) -> (i32, i32) {
    %c0_i32 = arith.constant 0 : i32
    %c0_i32_0 = arith.constant 0 : i32
    %c0_i32_1 = arith.constant 0 : i32
    return %c0_i32, %c0_i32_0 : i32, i32
  }
  func.func @transform_2(%arg0: i32) -> (i32, i32) {
    %c0_i32 = arith.constant 0 : i32
    %c0_i32_0 = arith.constant 0 : i32
    %c0_i32_1 = arith.constant 0 : i32
    return %c0_i32, %c0_i32_0 : i32, i32
  }
  func.func @transform_3(%arg0: i32) -> (i32, i32) {
    %c0_i32 = arith.constant 0 : i32
    %c0_i32_0 = arith.constant 0 : i32
    return %c0_i32, %arg0 : i32, i32
  }
}

</mosaic_0001>

<bundles_post_ra>
// kernel: inet_forward_t.1
= control target key start
LH: loop header
LB: loop body
LE: loop exit
PB: predicated region body
PF: predicated region fallthrough
CT: control target
= control target key end

     0   :  { %vm26_vm0 = vcmask 261120   ;;  %vm102_vm1 = vcmask 523264   ;;  %vm132_vm2 = vcmask 64512   ;;  %s249_s0 = inlined_call_operand.vmem [shape: f32[32,8], index: 0, kind: input, shape index: {}]   ;;  %s250_s1 = inlined_call_operand.vmem [shape: f32[64,32], index: 1, kind: input, shape index: {}]   ;;  %s251_s2 = inlined_call_operand.vmem [shape: f32[16,64], index: 2, kind: input, shape index: {}]   ;;  %s252_s3 = inlined_call_operand.vmem [shape: f32[16,8], index: 3, kind: output, shape index: {}]  }
   0x1   :  { %v25_v0 = vld [vmem:[%s249_s0 + $0x18] sm:$0xff]  ;;  %v24_v1 = vld [vmem:[%s249_s0 + $0x10] sm:$0xff]  ;;  %v23_v2 = vld [vmem:[%s249_s0 + $0x8] sm:$0xff] }
   0x2   :  { %149 = vmatpush.msra.mxu2 %v25_v0  ;;  %150 = vmatpush.msra.mxu3 %v25_v0  ;;  %v22_v3 = vld [vmem:[%s249_s0] sm:$0xff]  ;;  %v17_v4 = vld [vmem:[%s250_s1 + $0x18] sm:$0xff]  ;;  %v20_v5 = vld [vmem:[%s250_s1 + $0x30] sm:$0xff] }
   0x3   :  { %63 = vmatpush.msra.mxu0 %v25_v0  ;;  %v14_v6 = vld [vmem:[%s250_s1] sm:$0xff]  ;;  %v21_v8 = vld [vmem:[%s250_s1 + $0x38] sm:$0xff]  ;;  %v15_v9 = vld [vmem:[%s250_s1 + $0x8] sm:$0xff] }
   0x4   :  { %151 = vmatpush.msra.mxu2 %v24_v1  ;;  %152 = vmatpush.msra.mxu3 %v24_v1  ;;  %v18_v7 = vld [vmem:[%s250_s1 + $0x20] sm:$0xff]  ;;  %v19_v10 = vld [vmem:[%s250_s1 + $0x28] sm:$0xff]  ;;  %v16_v11 = vld [vmem:[%s250_s1 + $0x10] sm:$0xff] }
   0x5   :  { %64 = vmatpush.msra.mxu0 %v24_v1  ;;  %v100_v27 = vld [vmem:[%s251_s2] sm:$0xff]  ;;  %v101_v29 = vld [vmem:[%s251_s2 + $0x8] sm:$0xff] }
   0x6   :  { %153 = vmatpush.msra.mxu2 %v23_v2  ;;  %154 = vmatpush.msra.mxu3 %v23_v2 }
   0x7   :  { %65 = vmatpush.msra.mxu0 %v23_v2 }
   0x8   :  { %155 = vmatpush.msra.mxu2 %v22_v3  ;;  %156 = vmatpush.msra.mxu3 %v22_v3 }
   0x9   :  { %142 = vmatmul.msk.f32.vlgmr.msra.gmra.mxu2 %vm26_vm0, %v17_v4  ;;  %145 = vmatmul.msk.f32.vlgmr.msra.gmra.mxu3 %vm26_vm0, %v20_v5 }
   0xa   :  { %66 = vmatpush.msra.mxu0 %v22_v3 }
   0xb   :  { %139 = vmatmul.msk.f32.vlgmr.msra.gmra.mxu0 %vm26_vm0, %v14_v6 }
  0x11   :  { %143 = vmatmul.msk.f32.gmra.mxu2 %vm26_vm0, %v18_v7  ;;  %146 = vmatmul.msk.f32.gmra.mxu3 %vm26_vm0, %v21_v8 }
  0x13   :  { %140 = vmatmul.msk.f32.gmra.mxu0 %vm26_vm0, %v15_v9 }
  0x19   :  { %144 = vmatmul.msk.f32.gmra.mxu2 %vm26_vm0, %v19_v10 }
  0x1b   :  { %141 = vmatmul.msk.f32.gmra.mxu0 %vm26_vm0, %v16_v11 }
  0x88   :  { %v68_v12 = vpop.f32.mrf.mxu0 }
  0x8c   :  { %v77_v13 = vpop.f32.mrf.mxu2  ;;  %v86_v14 = vpop.f32.mrf.mxu3 }
  0x90   :  { %v71_v15 = vpop.f32.mrf.mxu0 }
  0x94   :  { %v80_v16 = vpop.f32.mrf.mxu2  ;;  %v89_v17 = vpop.f32.mrf.mxu3 }
  0x95   :  { %157 = vtanh.f32 %v89_v17 }
  0x96   :  { %159 = vtanh.f32 %v86_v14 }
  0x98   :  { %v74_v21 = vpop.f32.mrf.mxu0 }
  0x9b   :  { %v158_v18 = vpop.eup %157 }
  0x9c   :  { %v83_v19 = vpop.f32.mrf.mxu2  ;;  %117 = vmatpush.msra.mxu1 %v158_v18  ;;  %v160_v20 = vpop.eup %159 }
  0x9d   :  { %161 = vtanh.f32 %v83_v19 }
  0x9e   :  { %163 = vtanh.f32 %v80_v16  ;;  %118 = vmatpush.msra.mxu1 %v160_v20 }
  0x9f   :  { %165 = vtanh.f32 %v77_v13 }
  0xa0   :  { %167 = vtanh.f32 %v74_v21 }
  0xa1   :  { %169 = vtanh.f32 %v71_v15 }
  0xa2   :  { %171 = vtanh.f32 %v68_v12 }
  0xa3   :  { %v162_v22 = vpop.eup %161 }
  0xa4   :  { %119 = vmatpush.msra.mxu1 %v162_v22  ;;  %v164_v23 = vpop.eup %163 }
  0xa5   :  { %v166_v24 = vpop.eup %165 }
  0xa6   :  { %120 = vmatpush.msra.mxu1 %v164_v23  ;;  %v168_v25 = vpop.eup %167 }
  0xa7   :  { %v170_v26 = vpop.eup %169 }
  0xa8   :  { %121 = vmatpush.msra.mxu1 %v166_v24  ;;  %v172_v28 = vpop.eup %171 }
  0xaa   :  { %122 = vmatpush.msra.mxu1 %v168_v25 }
  0xac   :  { %123 = vmatpush.msra.mxu1 %v170_v26 }
  0xae   :  { %124 = vmatpush.msra.mxu1 %v172_v28 }
  0xaf   :  { %147 = vmatmul.msk.f32.vlgmr.msra.gmra.mxu1 %vm102_vm1, %v100_v27 }
  0xb7   :  { %148 = vmatmul.msk.f32.gmra.mxu1 %vm102_vm1, %v101_v29 }
 0x12c   :  { %v126_v30 = vpop.f32.mrf.mxu1 }
 0x12d   :  { %133 = vst.msk [vmem:[%s252_s3] sm:$0xff] %vm132_vm2, %v126_v30 }
 0x134   :  { %v129_v31 = vpop.f32.mrf.mxu1 }
 0x135   :  { %134 = vst.msk [vmem:[%s252_s3 + $0x8] sm:$0xff] %vm132_vm2, %v129_v31 }

</bundles_post_ra>
